<compile_context>
chip_gen: v5e
topology: v5e:2x2
jax: 0.10.0
libtpu: 0.0.40
codegen_flags: <defaults>
</compile_context>

<pallas_src>
import functools

import jax
import jax.numpy as jnp
import numpy as np
from jax.experimental import pallas as pl
from jax.experimental.pallas import tpu as pltpu

EPS = 1e-5  # nn.GroupNorm default
VMEM_LIMIT = 64 * 1024 * 1024


def _round_up(x, m):
    return (x + m - 1) // m * m


def _pad_last(a, c):
    pad = c - a.shape[-1]
    if pad == 0:
        return a
    return jnp.pad(a, [(0, 0)] * (a.ndim - 1) + [(0, pad)])


def _pad2(w, rows, cols):
    return jnp.pad(w, ((0, rows - w.shape[0]), (0, cols - w.shape[1])))


def _channel_tile(c):
    return 256 if c % 256 == 0 else 128


# ---------------------------------------------------------------------------
# One-pass GroupNorm(C, C) over the row axis of a (HW, TC) f32 tile.
# ---------------------------------------------------------------------------
def _gn_rows(y, inv_hw, gamma, beta):
    mean = jnp.sum(y, axis=0, keepdims=True) * inv_hw          # (1, TC)
    msq = jnp.sum(y * y, axis=0, keepdims=True) * inv_hw       # (1, TC)
    var = jnp.maximum(msq - mean * mean, 0.0)
    return (y - mean) * jax.lax.rsqrt(var + EPS) * gamma + beta


# ---------------------------------------------------------------------------
# Kernel 1: pointwise (1x1) conv -> GN(C,C) [-> ReLU] [-> + residual]
#   residual modes: "none" | "identity" (add x) | "conv" (fused shortcut conv+GN)
# ---------------------------------------------------------------------------
def _pointwise_gn_kernel(relu, mode, inv_hw, x_ref, w_ref, g_ref, b_ref, *rest):
    if mode == "conv":
        r_ref, wr_ref, gr_ref, br_ref, o_ref = rest
    elif mode == "identity":
        r_ref, o_ref = rest
    else:
        (o_ref,) = rest

    # bf16 x bf16 matmul on the MXU, f32 accumulation.
    y = jnp.dot(x_ref[0], w_ref[...], preferred_element_type=jnp.float32)
    y = _gn_rows(y, inv_hw, g_ref[...], b_ref[...])
    if relu:
        y = jnp.maximum(y, 0.0)

    if mode == "conv":
        r = jnp.dot(r_ref[0], wr_ref[...], preferred_element_type=jnp.float32)
        r = _gn_rows(r, inv_hw, gr_ref[...], br_ref[...])
        y = y + r
    elif mode == "identity":
        y = y + r_ref[0].astype(jnp.float32)

    o_ref[0] = y.astype(o_ref.dtype)


def pointwise_gn(x, w, gamma, beta, *, relu, out_dtype,
                 residual=None, res_w=None, res_g=None, res_b=None):
    """x: (N, HW, Cin) bf16; w: (Cin, Cout) bf16; gamma/beta: (1, Cout) f32.
    Channel dims must already be padded to a multiple of 128."""
    N, HW, Cin = x.shape
    Cout = w.shape[1]
    tc = _channel_tile(Cout)
    n_ct = Cout // tc

    if residual is None:
        mode = "none"
    elif res_w is None:
        mode = "identity"
    else:
        mode = "conv"

    in_specs = [
        pl.BlockSpec((1, HW, Cin), lambda n, c: (n, 0, 0)),
        pl.BlockSpec((Cin, tc), lambda n, c: (0, c)),
        pl.BlockSpec((1, tc), lambda n, c: (0, c)),
        pl.BlockSpec((1, tc), lambda n, c: (0, c)),
    ]
    args = [x, w, gamma, beta]

    if mode == "identity":
        in_specs.append(pl.BlockSpec((1, HW, tc), lambda n, c: (n, 0, c)))
        args.append(residual)
    elif mode == "conv":
        rin = residual.shape[-1]
        in_specs += [
            pl.BlockSpec((1, HW, rin), lambda n, c: (n, 0, 0)),
            pl.BlockSpec((rin, tc), lambda n, c: (0, c)),
            pl.BlockSpec((1, tc), lambda n, c: (0, c)),
            pl.BlockSpec((1, tc), lambda n, c: (0, c)),
        ]
        args += [residual, res_w, res_g, res_b]

    kernel = functools.partial(_pointwise_gn_kernel, relu, mode, 1.0 / float(HW))
    return pl.pallas_call(
        kernel,
        out_shape=jax.ShapeDtypeStruct((N, HW, Cout), out_dtype),
        grid=(N, n_ct),
        in_specs=in_specs,
        out_specs=pl.BlockSpec((1, HW, tc), lambda n, c: (n, 0, c)),
        compiler_params=pltpu.CompilerParams(
            dimension_semantics=("parallel", "parallel"),
            vmem_limit_bytes=VMEM_LIMIT),
    )(*args)


# ---------------------------------------------------------------------------
# Kernel 2: depthwise 3x3 conv (halo'd tile, in-kernel taps) -> GN(C,C) -> ReLU
# ---------------------------------------------------------------------------
def _depthwise_gn_kernel(stride, Ho, Wo, x_ref, w_ref, g_ref, b_ref, o_ref):
    w = w_ref[...]                                 # (9, TC) f32
    tc = w.shape[1]
    acc = jnp.zeros((1, Ho, Wo, tc), jnp.float32)
    for ki in range(3):
        for kj in range(3):
            if stride == 1:
                t = x_ref[:, ki:ki + Ho, kj:kj + Wo, :]
            else:
                t = x_ref[:, pl.ds(ki, Ho, stride), pl.ds(kj, Wo, stride), :]
            acc = acc + t.astype(jnp.float32) * w[3 * ki + kj]

    inv_hw = 1.0 / float(Ho * Wo)
    mean = jnp.sum(acc, axis=(1, 2), keepdims=True) * inv_hw
    msq = jnp.sum(acc * acc, axis=(1, 2), keepdims=True) * inv_hw
    var = jnp.maximum(msq - mean * mean, 0.0)
    y = (acc - mean) * jax.lax.rsqrt(var + EPS)
    y = y * g_ref[0] + b_ref[0]
    y = jnp.maximum(y, 0.0)
    o_ref[...] = y.astype(o_ref.dtype)


def depthwise_gn(x_pad, w, gamma, beta, *, stride, Ho, Wo, out_dtype):
    """x_pad: (N, H+2, W+2, C) bf16 (spatially zero-padded); w: (9, C) f32."""
    N, Hp, Wp, C = x_pad.shape
    tc = _channel_tile(C)
    n_ct = C // tc
    kernel = functools.partial(_depthwise_gn_kernel, stride, Ho, Wo)
    return pl.pallas_call(
        kernel,
        out_shape=jax.ShapeDtypeStruct((N, Ho, Wo, C), out_dtype),
        grid=(N, n_ct),
        in_specs=[
            pl.BlockSpec((1, Hp, Wp, tc), lambda n, c: (n, 0, 0, c)),
            pl.BlockSpec((9, tc), lambda n, c: (0, c)),
            pl.BlockSpec((1, tc), lambda n, c: (0, c)),
            pl.BlockSpec((1, tc), lambda n, c: (0, c)),
        ],
        out_specs=pl.BlockSpec((1, Ho, Wo, tc), lambda n, c: (n, 0, 0, c)),
        compiler_params=pltpu.CompilerParams(
            dimension_semantics=("parallel", "parallel"),
            vmem_limit_bytes=VMEM_LIMIT),
    )(x_pad, w, gamma, beta)


# ---------------------------------------------------------------------------
# Full block forward (matches QBWBlockGroupNorm.forward)
# ---------------------------------------------------------------------------
def qbw_block_groupnorm_forward(x_nchw, params, *, in_planes, out_planes,
                                expansion, stride):
    N, Cin, H, W = x_nchw.shape
    assert Cin == in_planes
    planes = expansion * in_planes

    cin_p = _round_up(in_planes, 128)
    pln_p = _round_up(planes, 128)
    out_p = _round_up(out_planes, 128)

    # NCHW -> NHWC at the block boundary (network-level code should stay NHWC).
    x = jnp.transpose(x_nchw, (0, 2, 3, 1)).astype(jnp.float32)
    x = _pad_last(x, cin_p)
    x_flat = x.reshape(N, H * W, cin_p).astype(jnp.bfloat16)

    # Lane-dense (multiple-of-128) parameter padding; matmul weights in bf16.
    w1 = _pad2(params["w1"], cin_p, pln_p).astype(jnp.bfloat16)
    g1 = _pad_last(params["g1"], pln_p)
    b1 = _pad_last(params["b1"], pln_p)
    w2 = _pad_last(params["w2"], pln_p)                       # (9, pln_p) f32
    g2 = _pad_last(params["g2"], pln_p)
    b2 = _pad_last(params["b2"], pln_p)
    w3 = _pad2(params["w3"], pln_p, out_p).astype(jnp.bfloat16)
    g3 = _pad_last(params["g3"], out_p)
    b3 = _pad_last(params["b3"], out_p)

    # conv1 (1x1) -> gn1 -> relu                      (bf16 intermediate)
    h1 = pointwise_gn(x_flat, w1, g1, b1, relu=True, out_dtype=jnp.bfloat16)

    # conv2 (depthwise 3x3, padding=1, stride) -> gn2 -> relu
    h1_img = h1.reshape(N, H, W, pln_p)
    h1_pad = jnp.pad(h1_img, ((0, 0), (1, 1), (1, 1), (0, 0)))   # spatial halo
    Ho = (H - 1) // stride + 1
    Wo = (W - 1) // stride + 1
    h2 = depthwise_gn(h1_pad, w2, g2, b2, stride=stride, Ho=Ho, Wo=Wo,
                      out_dtype=jnp.bfloat16)
    h2_flat = h2.reshape(N, Ho * Wo, pln_p)

    # conv3 (1x1) -> gn3  (+ fused shortcut branch when stride == 1)
    if stride == 1 and in_planes != out_planes:
        ws = _pad2(params["ws"], cin_p, out_p).astype(jnp.bfloat16)
        gs = _pad_last(params["gs"], out_p)
        bs = _pad_last(params["bs"], out_p)
        out = pointwise_gn(h2_flat, w3, g3, b3, relu=False, out_dtype=jnp.float32,
                           residual=x_flat, res_w=ws, res_g=gs, res_b=bs)
    elif stride == 1:
        out = pointwise_gn(h2_flat, w3, g3, b3, relu=False, out_dtype=jnp.float32,
                           residual=x_flat)                  # identity residual
    else:
        out = pointwise_gn(h2_flat, w3, g3, b3, relu=False, out_dtype=jnp.float32)

    out = out.reshape(N, Ho, Wo, out_p)[:, :, :, :out_planes]
    return jnp.transpose(out, (0, 3, 1, 2))                  # back to NCHW


# ---------------------------------------------------------------------------
# Pure-JAX f32 reference (same math, no Pallas, no bf16) for correctness check.
# ---------------------------------------------------------------------------
def ref_forward(x_nchw, params, *, in_planes, out_planes, expansion, stride):
    x = jnp.transpose(x_nchw, (0, 2, 3, 1)).astype(jnp.float32)
    N, H, W, _ = x.shape
    planes = expansion * in_planes

    def gn(y, g, b):                       # y: (N, HW, C); per-(n, c) over HW
        mean = jnp.mean(y, axis=1, keepdims=True)
        var = jnp.mean((y - mean) ** 2, axis=1, keepdims=True)
        return (y - mean) / jnp.sqrt(var + EPS) * g + b

    x_flat = x.reshape(N, H * W, in_planes)
    out = jax.nn.relu(gn(jnp.einsum("npc,cd->npd", x_flat, params["w1"]),
                         params["g1"], params["b1"]))
    out = out.reshape(N, H, W, planes)

    xp = jnp.pad(out, ((0, 0), (1, 1), (1, 1), (0, 0)))
    Ho = (H - 1) // stride + 1
    Wo = (W - 1) // stride + 1
    dw = jnp.zeros((N, Ho, Wo, planes), jnp.float32)
    for ki in range(3):
        for kj in range(3):
            sl = xp[:, ki:ki + stride * (Ho - 1) + 1:stride,
                       kj:kj + stride * (Wo - 1) + 1:stride, :]
            dw = dw + sl * params["w2"][3 * ki + kj]
    out = jax.nn.relu(gn(dw.reshape(N, Ho * Wo, planes), params["g2"], params["b2"]))

    res = None
    if stride == 1 and in_planes != out_planes:
        res = gn(jnp.einsum("npc,cd->npd", x_flat, params["ws"]),
                 params["gs"], params["bs"])
    elif stride == 1:
        res = x_flat

    out = gn(jnp.einsum("npc,cd->npd", out, params["w3"]),
             params["g3"], params["b3"])
    if res is not None:
        out = out + res
    out = out.reshape(N, Ho, Wo, out_planes)
    return jnp.transpose(out, (0, 3, 1, 2))


# ---------------------------------------------------------------------------
def make_params(key, in_planes, out_planes, expansion):
    planes = expansion * in_planes
    ks = jax.random.split(key, 12)
    return {
        # 1x1 convs as (Cin, Cout) matmul matrices (== torch weight[:, :, 0, 0].T)
        "w1": 0.2 * jax.random.normal(ks[0], (in_planes, planes), jnp.float32),
        "g1": 1.0 + 0.1 * jax.random.normal(ks[1], (1, planes), jnp.float32),
        "b1": 0.1 * jax.random.normal(ks[2], (1, planes), jnp.float32),
        # depthwise 3x3 as (9, planes), tap-major (== torch weight[c, 0, ki, kj])
        "w2": 0.2 * jax.random.normal(ks[3], (9, planes), jnp.float32),
        "g2": 1.0 + 0.1 * jax.random.normal(ks[4], (1, planes), jnp.float32),
        "b2": 0.1 * jax.random.normal(ks[5], (1, planes), jnp.float32),
        "w3": 0.2 * jax.random.normal(ks[6], (planes, out_planes), jnp.float32),
        "g3": 1.0 + 0.1 * jax.random.normal(ks[7], (1, out_planes), jnp.float32),
        "b3": 0.1 * jax.random.normal(ks[8], (1, out_planes), jnp.float32),
        # shortcut (only used when stride == 1 and in_planes != out_planes)
        "ws": 0.2 * jax.random.normal(ks[9], (in_planes, out_planes), jnp.float32),
        "gs": 1.0 + 0.1 * jax.random.normal(ks[10], (1, out_planes), jnp.float32),
        "bs": 0.1 * jax.random.normal(ks[11], (1, out_planes), jnp.float32),
    }


def _run_and_check(key, *, N, in_planes, out_planes, expansion, stride, H, W):
    k_x, k_p = jax.random.split(key)
    x = jax.random.normal(k_x, (N, in_planes, H, W), jnp.float32)
    params = make_params(k_p, in_planes, out_planes, expansion)

    out = qbw_block_groupnorm_forward(
        x, params, in_planes=in_planes, out_planes=out_planes,
        expansion=expansion, stride=stride)
    out = jax.block_until_ready(out)

    ref = ref_forward(
        x, params, in_planes=in_planes, out_planes=out_planes,
        expansion=expansion, stride=stride)
    ref = jax.block_until_ready(ref)

    assert out.shape == ref.shape == (N, out_planes, H, W)
    o = np.asarray(out, np.float64)
    r = np.asarray(ref, np.float64)
    rel_l2 = np.linalg.norm(o - r) / max(np.linalg.norm(r), 1e-12)
    assert rel_l2 < 3e-2, f"relative L2 error too large: {rel_l2}"
    # Loose elementwise check (kernel uses bf16 matmuls + bf16 intermediates).
    np.testing.assert_allclose(o, r, rtol=1e-1, atol=1e-1)
    return out


if __name__ == "__main__":
    key = jax.random.PRNGKey(0)
    k1, k2 = jax.random.split(key)

    # Config 1: stride=1, in_planes != out_planes  -> fused shortcut-conv path.
    _run_and_check(k1, N=2, in_planes=8, out_planes=24, expansion=2, stride=1,
                   H=16, W=16)

    # Config 2: stride=1, in_planes == out_planes  -> identity-residual path.
    _run_and_check(k2, N=2, in_planes=16, out_planes=16, expansion=2, stride=1,
                   H=16, W=16)

    print("KERNEL_OK")
</pallas_src>

<mosaic_0001>
module attributes {stable_mosaic.version = 11 : i64} {
  func.func @_pointwise_gn_kernel(%arg0: i32, %arg1: i32, %arg2: memref<1x256x128xbf16, #tpu.memory_space<vmem>>, %arg3: memref<128x128xbf16, #tpu.memory_space<vmem>>, %arg4: memref<1x128xf32, #tpu.memory_space<vmem>>, %arg5: memref<1x128xf32, #tpu.memory_space<vmem>>, %arg6: memref<1x256x128xbf16, #tpu.memory_space<vmem>>) attributes {dimension_semantics = [#tpu.dimension_semantics<parallel>, #tpu.dimension_semantics<parallel>], iteration_bounds = array<i64: 2, 1>, scalar_prefetch = 0 : i64, scratch_operands = 0 : i64, tpu.core_type = #tpu.core_type<tc>, window_params = [{transform_indices = @transform_0, window_bounds = array<i64: 1, 256, 128>}, {transform_indices = @transform_1, window_bounds = array<i64: 128, 128>}, {transform_indices = @transform_2, window_bounds = array<i64: 1, 128>}, {transform_indices = @transform_3, window_bounds = array<i64: 1, 128>}, {transform_indices = @transform_4, window_bounds = array<i64: 1, 256, 128>}]} {
    %c0 = arith.constant 0 : index
    %c0_0 = arith.constant 0 : index
    %c0_1 = arith.constant 0 : index
    %0 = vector.load %arg2[%c0, %c0_0, %c0_1] : memref<1x256x128xbf16, #tpu.memory_space<vmem>>, vector<1x256x128xbf16>
    %1 = vector.shape_cast %0 : vector<1x256x128xbf16> to vector<256x128xbf16>
    %c0_2 = arith.constant 0 : index
    %c0_3 = arith.constant 0 : index
    %2 = vector.load %arg3[%c0_2, %c0_3] : memref<128x128xbf16, #tpu.memory_space<vmem>>, vector<128x128xbf16>
    %cst = arith.constant dense<0.000000e+00> : vector<256x128xf32>
    %3 = tpu.matmul %1, %2, %cst {dimension_numbers = #tpu.dot_dimension_numbers<[1], [0], [0], [1], [0, 0, 1, 1], [], []>} : vector<256x128xbf16>, vector<128x128xbf16>, vector<256x128xf32> -> vector<256x128xf32>
    %c0_4 = arith.constant 0 : index
    %c0_5 = arith.constant 0 : index
    %4 = vector.load %arg4[%c0_4, %c0_5] : memref<1x128xf32, #tpu.memory_space<vmem>>, vector<1x128xf32>
    %c0_6 = arith.constant 0 : index
    %c0_7 = arith.constant 0 : index
    %5 = vector.load %arg5[%c0_6, %c0_7] : memref<1x128xf32, #tpu.memory_space<vmem>>, vector<1x128xf32>
    %cst_8 = arith.constant dense<0.000000e+00> : vector<128xf32>
    %6 = vector.multi_reduction <add>, %3, %cst_8 [0] : vector<256x128xf32> to vector<128xf32>
    %7 = vector.shape_cast %6 : vector<128xf32> to vector<1x128xf32>
    %cst_9 = arith.constant 3.906250e-03 : f32
    %8 = vector.broadcast %cst_9 : f32 to vector<1x128xf32>
    %9 = arith.mulf %7, %8 : vector<1x128xf32>
    %10 = arith.mulf %3, %3 : vector<256x128xf32>
    %cst_10 = arith.constant dense<0.000000e+00> : vector<128xf32>
    %11 = vector.multi_reduction <add>, %10, %cst_10 [0] : vector<256x128xf32> to vector<128xf32>
    %12 = vector.shape_cast %11 : vector<128xf32> to vector<1x128xf32>
    %cst_11 = arith.constant 3.906250e-03 : f32
    %13 = vector.broadcast %cst_11 : f32 to vector<1x128xf32>
    %14 = arith.mulf %12, %13 : vector<1x128xf32>
    %15 = arith.mulf %9, %9 : vector<1x128xf32>
    %16 = arith.subf %14, %15 : vector<1x128xf32>
    %cst_12 = arith.constant 0.000000e+00 : f32
    %17 = vector.broadcast %cst_12 : f32 to vector<1x128xf32>
    %18 = arith.maximumf %16, %17 : vector<1x128xf32>
    %19 = vector.broadcast %9 : vector<1x128xf32> to vector<256x128xf32>
    %20 = arith.subf %3, %19 : vector<256x128xf32>
    %cst_13 = arith.constant 9.99999974E-6 : f32
    %21 = vector.broadcast %cst_13 : f32 to vector<1x128xf32>
    %22 = arith.addf %18, %21 : vector<1x128xf32>
    %23 = math.rsqrt %22 : vector<1x128xf32>
    %24 = vector.broadcast %23 : vector<1x128xf32> to vector<256x128xf32>
    %25 = arith.mulf %20, %24 : vector<256x128xf32>
    %26 = vector.broadcast %4 : vector<1x128xf32> to vector<256x128xf32>
    %27 = arith.mulf %25, %26 : vector<256x128xf32>
    %28 = vector.broadcast %5 : vector<1x128xf32> to vector<256x128xf32>
    %29 = arith.addf %27, %28 : vector<256x128xf32>
    %cst_14 = arith.constant 0.000000e+00 : f32
    %30 = vector.broadcast %cst_14 : f32 to vector<256x128xf32>
    %31 = arith.maximumf %29, %30 : vector<256x128xf32>
    %32 = arith.truncf %31 : vector<256x128xf32> to vector<256x128xbf16>
    %c0_15 = arith.constant 0 : index
    %c0_16 = arith.constant 0 : index
    %c0_17 = arith.constant 0 : index
    %33 = vector.load %arg6[%c0_15, %c0_16, %c0_17] : memref<1x256x128xbf16, #tpu.memory_space<vmem>>, vector<1x256x128xbf16>
    %34 = vector.shape_cast %33 : vector<1x256x128xbf16> to vector<256x128xbf16>
    %35 = vector.shape_cast %32 : vector<256x128xbf16> to vector<1x256x128xbf16>
    tpu.vector_store %arg6[%c0_15, %c0_16, %c0_17], %35 {strides = array<i32>} : memref<1x256x128xbf16, #tpu.memory_space<vmem>>, vector<1x256x128xbf16>,
    return
  }
  func.func @transform_0(%arg0: i32, %arg1: i32) -> (i32, i32, i32) {
    %c0_i32 = arith.constant 0 : i32
    %c0_i32_0 = arith.constant 0 : i32
    %c0_i32_1 = arith.constant 0 : i32
    return %arg0, %c0_i32, %c0_i32_0 : i32, i32, i32
  }
  func.func @transform_1(%arg0: i32, %arg1: i32) -> (i32, i32) {
    %c0_i32 = arith.constant 0 : i32
    %c0_i32_0 = arith.constant 0 : i32
    return %c0_i32, %arg1 : i32, i32
  }
  func.func @transform_2(%arg0: i32, %arg1: i32) -> (i32, i32) {
    %c0_i32 = arith.constant 0 : i32
    %c0_i32_0 = arith.constant 0 : i32
    return %c0_i32, %arg1 : i32, i32
  }
  func.func @transform_3(%arg0: i32, %arg1: i32) -> (i32, i32) {
    %c0_i32 = arith.constant 0 : i32
    %c0_i32_0 = arith.constant 0 : i32
    return %c0_i32, %arg1 : i32, i32
  }
  func.func @transform_4(%arg0: i32, %arg1: i32) -> (i32, i32, i32) {
    %c0_i32 = arith.constant 0 : i32
    %c0_i32_0 = arith.constant 0 : i32
    return %arg0, %c0_i32, %arg1 : i32, i32, i32
  }
}

</mosaic_0001>

<bundles_post_ra>
// kernel: tpu_custom_call.1
= control target key start
LH: loop header
LB: loop body
LE: loop exit
PB: predicated region body
PF: predicated region fallthrough
CT: control target
= control target key end

     0   :  { %s2100_s0 = inlined_call_operand.hbm [shape: bf16[2,256,128], index: 0, kind: input, shape index: {}]   ;;  %s2101_s1 = inlined_call_operand.hbm [shape: bf16[128,128], index: 1, kind: input, shape index: {}]   ;;  %s2102_s2 = inlined_call_operand.vmem [shape: f32[1,128], index: 2, kind: input, shape index: {}]   ;;  %s2103_s3 = inlined_call_operand.vmem [shape: f32[1,128], index: 3, kind: input, shape index: {}]   ;;  %s2104_s4 = inlined_call_operand.hbm [shape: bf16[2,256,128], index: 4, kind: output, shape index: {}]  }
   0x1   :  { %2108 = sst [smem:[#allocation12_spill]] %s2101_s1 }
   0x2   :  { %9 = vsyncpa [#allocation3], 0 }
   0x3   :  { %11 = vsyncpa [#allocation3 + $0x1], 0 }
   0x4   :  { %12 = vsyncpa [#allocation6], 0 }
   0x5   :  { %13 = vsyncpa [#allocation4], 0 }
   0x6   :  { %15 = vsyncpa [#allocation4 + $0x1], 0  ;;  %s1574_s15 = smov 0   ;;  %s1576_s16 = smov 0  }
   0x7   :  { %s1578_s17 = smov 0   ;;  %s1580_s18 = smov 0  }
   0x8   :  { %s1582_s19 = smov 0   ;;  %s1584_s20 = smov 0  }
   0x9 LB: > { %s1055_s21 = sadd.s32 4294967295, %s1542_s20   ;;  %s1056_s22 = sadd.s32 4294967294, %s1542_s20   ;;  %s1542_s20 = sphi %s1584_s20, %s21_s20   ;;  %s1538_s19 = sphi %s1582_s19, %s2125_s19   ;;  %s1534_s18 = sphi %s1580_s18, %s2124_s18   ;;  %s1530_s17 = sphi %s1578_s17, %s2123_s17   ;;  %s1526_s16 = sphi %s1576_s16, %s2122_s16   ;;  %s1522_s15 = sphi %s1574_s15, %s2121_s15  }
   0xa   : > { %p53_p0 = scmp.ne.s32.totalorder %s1526_s16, %s1522_s15  ;;  %p1608_p1 = scmp.eq.s32.totalorder %s1055_s21, 0 }
   0xb   : > { %p1612_p2 = scmp.eq.s32.totalorder %s1055_s21, 1  ;;  %p163_p3 = scmp.eq.s32.totalorder %s1056_s22, 1 }
   0xc   : > { %p1618_p4 = por %p1608_p1, %p53_p0  ;;  %p1057_p5 = scmp.ge.s32.totalorder %s1542_s20, 1 }
   0xd   : > { %p1623_p6 = por %p163_p3, %p53_p0  ;;  %p170_p7 = scmp.lt.s32.totalorder %s1542_s20, 3 }
   0xe   : > { %s2113_s1 = sld [smem:[#allocation12_spill]]  ;;  %s1544_s5 = smov [#allocation5]  }
   0xf   : > { %p1631_p8 = pnand %p1057_p5, %p170_p7  ;;  %s185_s6 = sshll.u32 %s1544_s5, 4  ;;  %s186_s6 = int_to_ptr.vmem [resolvable:$true] %s185_s6 }
  0x10   : > { %p1061_p11 = scmp.ge.s32.totalorder %s1542_s20, 2  ;;  %s2105_s7 = smov 64  }
  0x11   : > { %p1323_p9 = pneg %p1631_p8  ;;  %s2106_s8 = smov 4  }
  0x12   : > { %s33_s9 = sadd.s32 1, %s1538_s19  ;;  %s40_s10 = sadd.s32 1, %s1530_s17 }
  0x13   : > { %p1324_p10 = pnand %p1323_p9, %p1608_p1  ;;  %p35_p12 = scmp.ge.s32.totalorder %s33_s9, 2 }
  0x14   : > { %s183_s29 = sshll.u32 %s2113_s1, 4  ;;  %p47_p13 = scmp.ne.s32.totalorder %s1530_s17, %s1526_s16  ;;  %s184_s29 = int_to_ptr.hbm [resolvable:$true] %s183_s29 }
  0x15   : > { %1326 = dma.hbm_to_vmem [thread:$0]  (!%p1324_p10), %s184_s29, 1024, %s186_s6, [#allocation6], %s2105_s7, %s2105_s7, %s2106_s8  }
  0x16   : > { %p48_p0 = scmp.eq.s32.totalorder %s1542_s20, 0  ;;  %s2127_s9 = smov (%p35_p12, %s33_s9), 0 }
  0x17   : > { %2115 = sst [smem:[#allocation11_spill]] %s2127_s9  ;;  %p1656_p5 = por %p1612_p2, %p47_p13 }
  0x18   : > { %p1650_p3 = por %p48_p0, %p47_p13  ;;  %s37_s13 = ssub.s32 %s1538_s19, %s2127_s9 }
  0x19   : > { %p1336_p7 = scmp.lt.s32.totalorder %s1542_s20, 2  ;;  %p38_p9 = scmp.eq.s32.totalorder %s37_s13, 0 }
  0x1a   : > { %s211_s14 = sand.u32 1, %s1530_s17   ;;  %s1170_s27 = sshll.u32 %s1538_s19, 7 }
  0x1b   : > { %s1062_s21 = sshll.u32 %s211_s14, 7  ;;  %s220_s5 = scalar_lea.hbm %s2100_s0, %s1170_s27 }
  0x1c   : > { %s1665_s22 = scalar_select %p38_p9, %s1530_s17, %s40_s10  }
  0x1d   : > { %s215_s6 = scalar_lea.vmem [#allocation2], %s1062_s21  ;;  %s221_s24 = sshll.u32 %s220_s5, 4  ;;  %s222_s24 = int_to_ptr.hbm [resolvable:$true] %s221_s24 }
  0x1e   : > { %s223_s7 = sshll.u32 %s215_s6, 4  ;;  %p1328_p2 = pnand %p1336_p7, %p1650_p3  ;;  %s224_s7 = int_to_ptr.vmem [resolvable:$true] %s223_s7 }
  0x1f   : > { %s212_s8 = scalar_lea.sflag [#allocation3], %s211_s14  ;;  %s2118_s1 = smov 4  }
  0x20   : > { %s2119_s9 = smov 64   ;;  %235 = sbr.rel (%p1631_p8) target bundleno = 391 (0x187), region = 36 }
  0x21   : > { %1330 = dma.hbm_to_vmem [thread:$0]  (!%p1328_p2), %s222_s24, 2048, %s224_s7, %s212_s8, %s2119_s9, %s2119_s9, %s2118_s1  }
  0x22   : > { %s1679_s10 = sand.u32 (!%p1631_p8), 1, %s1526_s16  }
  0x23   : > { %s1066_s13 = sshll.u32 (!%p1631_p8), %s1679_s10, 7  ;;  %s238_s21 = scalar_lea.sflag (!%p1631_p8), [#allocation3], %s1679_s10 }
  0x24   : > { %s1685_s11 = scalar_lea.vmem (!%p1631_p8), [#allocation2], %s1066_s13 }
  0x25   : > { %1509 = dma.done.wait (%p1618_p4), %s238_s21, 2048  }
  0x26   : > { %1511 = vsyncadd (%p1618_p4), %s238_s21, 4294965248 }
  0x27   : > { %1513 = dma.done.wait (%p1608_p1), [#allocation6], 1024  }
  0x28   : > { %1515 = vsyncadd (%p1608_p1), [#allocation6], 4294966272  ;;  %v1194_v0 = vld [vmem:[#allocation5 + $0x38] sm:$0xff]  ;;  %v1193_v1 = vld [vmem:[#allocation5 + $0x30] sm:$0xff]  ;;  %s1964_s7 = scalar_lea.vmem [#allocation7], %s1066_s13  ;;  %s1195_s8 = sshll.u32 %s1534_s18, 7 }
  0x29   : > { %476 = vmatpush.bf16.msra.mxu0 %v1194_v0  ;;  %1291 = vmatpush.bf16.msra.mxu1 %v1194_v0  ;;  %v1192_v2 = vld [vmem:[#allocation5 + $0x28] sm:$0xff]  ;;  %v1191_v3 = vld [vmem:[#allocation5 + $0x20] sm:$0xff]  ;;  %v1190_v4 = vld [vmem:[#allocation5 + $0x18] sm:$0xff]  ;;  %s932_s14 = scalar_lea.hbm %s2104_s4, %s1195_s8  ;;  %s933_s27 = sshll.u32 %s1964_s7, 4  ;;  %s934_s27 = int_to_ptr.vmem [resolvable:$true] %s933_s27 }
  0x2a   : > { %1292 = vmatpush.bf16.msra.mxu2 %v1194_v0  ;;  %1293 = vmatpush.bf16.msra.mxu3 %v1194_v0  ;;  %v1189_v5 = vld [vmem:[#allocation5 + $0x10] sm:$0xff]  ;;  %v1188_v6 = vld [vmem:[#allocation5 + $0x8] sm:$0xff]  ;;  %v1187_v7 = vld [vmem:[#allocation5] sm:$0xff]  ;;  %s935_s28 = sshll.u32 %s932_s14, 4  ;;  %s920_s29 = scalar_lea.sflag [#allocation4], %s1679_s10  ;;  %s936_s28 = int_to_ptr.hbm [resolvable:$true] %s935_s28 }
  0x2b   : > { %v1171_v8 = vld [vmem:[%s1685_s11] sm:$0xff]  ;;  %v1172_v12 = vld [vmem:[%s1685_s11 + $0x8] sm:$0xff]  ;;  %v1173_v16 = vld [vmem:[%s1685_s11 + $0x10] sm:$0xff]  ;;  %s1470_s5 = sshra.s32 %s936_s28, 4  ;;  %s1476_s21 = scalar_lea.hbm %s2104_s4, 256  ;;  %s1471_s5 = int_to_ptr.hbm [resolvable:$true] %s1470_s5 }
  0x2c   : > { %v1175_v9 = vld [vmem:[%s1685_s11 + $0x20] sm:$0xff]  ;;  %v1176_v13 = vld [vmem:[%s1685_s11 + $0x28] sm:$0xff]  ;;  %v1177_v17 = vld [vmem:[%s1685_s11 + $0x30] sm:$0xff]  ;;  %s1472_s6 = scalar_lea.hbm %s1471_s5, 128  ;;  %p1477_p10 = scmp.lt.s32.totalorder %s1471_s5, %s2104_s4 }
  0x2d   : > { %477 = vmatpush.bf16.msra.mxu0 %v1193_v1  ;;  %1294 = vmatpush.bf16.msra.mxu1 %v1193_v1  ;;  %v1179_v10 = vld [vmem:[%s1685_s11 + $0x40] sm:$0xff]  ;;  %v1180_v14 = vld [vmem:[%s1685_s11 + $0x48] sm:$0xff]  ;;  %v1181_v18 = vld [vmem:[%s1685_s11 + $0x50] sm:$0xff]  ;;  %p1473_p1 = scmp.ne.s32.totalorder %s1471_s5, %s1472_s6  ;;  %p1478_p12 = scmp.lt.s32.totalorder %s1476_s21, %s1472_s6 }
  0x2e   : > { %1295 = vmatpush.bf16.msra.mxu2 %v1193_v1  ;;  %1296 = vmatpush.bf16.msra.mxu3 %v1193_v1  ;;  %v1183_v11 = vld [vmem:[%s1685_s11 + $0x60] sm:$0xff]  ;;  %v1184_v15 = vld [vmem:[%s1685_s11 + $0x68] sm:$0xff]  ;;  %v1185_v19 = vld [vmem:[%s1685_s11 + $0x70] sm:$0xff] }
  0x2f   : > { %v1174_v20 = vld [vmem:[%s1685_s11 + $0x18] sm:$0xff]  ;;  %p1474_p4 = pnand %p1473_p1, %p1656_p5  ;;  %p1479_p13 = por %p1478_p12, %p1477_p10 }
  0x30   : > { %v1178_v21 = vld [vmem:[%s1685_s11 + $0x38] sm:$0xff] }
  0x31   : > { %478 = vmatpush.bf16.msra.mxu0 %v1192_v2  ;;  %1297 = vmatpush.bf16.msra.mxu1 %v1192_v2  ;;  %v1182_v22 = vld [vmem:[%s1685_s11 + $0x58] sm:$0xff]  ;;  %p1475_p8 = pneg %p1474_p4 }
  0x32   : > { %1298 = vmatpush.bf16.msra.mxu2 %v1192_v2  ;;  %1299 = vmatpush.bf16.msra.mxu3 %v1192_v2  ;;  %v1186_v23 = vld [vmem:[%s1685_s11 + $0x78] sm:$0xff] }
  0x33   : > { %p1480_p0 = pnand %p1479_p13, %p1475_p8 }
  0x35   : > { %479 = vmatpush.bf16.msra.mxu0 %v1191_v3  ;;  %1300 = vmatpush.bf16.msra.mxu1 %v1191_v3 }
  0x36   : > { %1301 = vmatpush.bf16.msra.mxu2 %v1191_v3  ;;  %1302 = vmatpush.bf16.msra.mxu3 %v1191_v3 }
  0x39   : > { %480 = vmatpush.bf16.msra.mxu0 %v1190_v4  ;;  %1303 = vmatpush.bf16.msra.mxu1 %v1190_v4 }
  0x3a   : > { %1304 = vmatpush.bf16.msra.mxu2 %v1190_v4  ;;  %1305 = vmatpush.bf16.msra.mxu3 %v1190_v4 }
  0x3d   : > { %481 = vmatpush.bf16.msra.mxu0 %v1189_v5  ;;  %1306 = vmatpush.bf16.msra.mxu1 %v1189_v5 }
  0x3e   : > { %1307 = vmatpush.bf16.msra.mxu2 %v1189_v5  ;;  %1308 = vmatpush.bf16.msra.mxu3 %v1189_v5 }
  0x41   : > { %482 = vmatpush.bf16.msra.mxu0 %v1188_v6  ;;  %1309 = vmatpush.bf16.msra.mxu1 %v1188_v6 }
  0x42   : > { %1310 = vmatpush.bf16.msra.mxu2 %v1188_v6  ;;  %1311 = vmatpush.bf16.msra.mxu3 %v1188_v6 }
  0x45   : > { %483 = vmatpush.bf16.msra.mxu0 %v1187_v7  ;;  %1312 = vmatpush.bf16.msra.mxu1 %v1187_v7 }
  0x46   : > { %1313 = vmatpush.bf16.msra.mxu2 %v1187_v7  ;;  %1314 = vmatpush.bf16.msra.mxu3 %v1187_v7 }
  0x48   : > { %484 = vmatmul.bf16.vlgmr.msra.gmra.mxu0 %v1171_v8  ;;  %504 = vmatmul.bf16.vlgmr.msra.gmra.mxu1 %v1175_v9 }
  0x49   : > { %524 = vmatmul.bf16.vlgmr.msra.gmra.mxu2 %v1179_v10  ;;  %544 = vmatmul.bf16.vlgmr.msra.gmra.mxu3 %v1183_v11 }
  0x58   : > { %489 = vmatmul.bf16.gmra.mxu0 %v1172_v12  ;;  %509 = vmatmul.bf16.gmra.mxu1 %v1176_v13 }
  0x59   : > { %529 = vmatmul.bf16.gmra.mxu2 %v1180_v14  ;;  %549 = vmatmul.bf16.gmra.mxu3 %v1184_v15 }
  0x68   : > { %494 = vmatmul.bf16.gmra.mxu0 %v1173_v16  ;;  %514 = vmatmul.bf16.gmra.mxu1 %v1177_v17 }
  0x69   : > { %534 = vmatmul.bf16.gmra.mxu2 %v1181_v18  ;;  %554 = vmatmul.bf16.gmra.mxu3 %v1185_v19 }
  0x78   : > { %499 = vmatmul.bf16.gmra.mxu0 %v1174_v20  ;;  %519 = vmatmul.bf16.gmra.mxu1 %v1178_v21 }
  0x79   : > { %539 = vmatmul.bf16.gmra.mxu2 %v1182_v22  ;;  %559 = vmatmul.bf16.gmra.mxu3 %v1186_v23 }
  0xc5   : > { %v1711_v24 = vpop.f32.mrf.mxu0  ;;  %v1713_v25 = vpop.f32.mrf.mxu1 }
  0xc6   : > { %v605_v41 = vmul.f32 %v1711_v24, %v1711_v24  ;;  %v613_v3 = vmul.f32 %v1713_v25, %v1713_v25 }
  0xcc   : > { %v1721_v29 = vpop.f32.mrf.mxu2  ;;  %v1733_v35 = vpop.f32.mrf.mxu3 }
  0xcd   : > { %v1715_v26 = vpop.f32.mrf.mxu0  ;;  %v1717_v27 = vpop.f32.mrf.mxu1 }
  0xce   : > { %v606_v40 = vmul.f32 %v1715_v26, %v1715_v26  ;;  %v567_v42 = vadd.f32 %v1715_v26, %v1711_v24  ;;  %v614_v7 = vmul.f32 %v1717_v27, %v1717_v27 }
  0xd0   : > { %v637_v45 = vadd.f32 %v606_v40, %v605_v41 }
  0xd4   : > { %v1727_v32 = vpop.f32.mrf.mxu2  ;;  %v1741_v39 = vpop.f32.mrf.mxu3 }
  0xd5   : > { %v1719_v28 = vpop.f32.mrf.mxu0  ;;  %v1723_v30 = vpop.f32.mrf.mxu1 }
  0xd6   : > { %v607_v43 = vmul.f32 %v1719_v28, %v1719_v28  ;;  %v568_v46 = vadd.f32 %v567_v42, %v1719_v28  ;;  %v615_v11 = vmul.f32 %v1723_v30, %v1723_v30 }
  0xd8   : > { %v638_v49 = vadd.f32 %v637_v45, %v607_v43 }
  0xdc   : > { %v1735_v36 = vpop.f32.mrf.mxu2  ;;  %v1766_v56 = vpop.f32.mrf.mxu3 }
  0xdd   : > { %v1725_v31 = vpop.f32.mrf.mxu0  ;;  %v1729_v33 = vpop.f32.mrf.mxu1 }
  0xde   : > { %v608_v47 = vmul.f32 %v1725_v31, %v1725_v31  ;;  %v569_v50 = vadd.f32 %v568_v46, %v1725_v31  ;;  %v616_v14 = vmul.f32 %v1729_v33, %v1729_v33 }
  0xe0   : > { %v639_v53 = vadd.f32 %v638_v49, %v608_v47 }
  0xe4   : > { %v1751_v44 = vpop.f32.mrf.mxu2  ;;  %v1787_v10 = vpop.f32.mrf.mxu3 }
  0xe5   : > { %v1731_v34 = vpop.f32.mrf.mxu0  ;;  %v1739_v38 = vpop.f32.mrf.mxu1 }
  0xe6   : > { %v609_v51 = vmul.f32 %v1731_v34, %v1731_v34  ;;  %v570_v54 = vadd.f32 %v569_v50, %v1731_v34  ;;  %v617_v18 = vmul.f32 %v1739_v38, %v1739_v38  ;;  %v621_v50 = vmul.f32 %v1721_v29, %v1721_v29 }
  0xe8   : > { %v640_v57 = vadd.f32 %v639_v53, %v609_v51 }
  0xec   : > { %v1774_v63 = vpop.f32.mrf.mxu2  ;;  %v1808_v45 = vpop.f32.mrf.mxu3 }
  0xed   : > { %v1737_v37 = vpop.f32.mrf.mxu0  ;;  %v1761_v52 = vpop.f32.mrf.mxu1 }
  0xee   : > { %v610_v55 = vmul.f32 %v1737_v37, %v1737_v37  ;;  %v571_v58 = vadd.f32 %v570_v54, %v1737_v37  ;;  %v618_v21 = vmul.f32 %v1761_v52, %v1761_v52 }
  0xf0   : > { %v641_v60 = vadd.f32 %v640_v57, %v610_v55  ;;  %v622_v55 = vmul.f32 %v1727_v32, %v1727_v32 }
  0xf4   : > { %v1795_v17 = vpop.f32.mrf.mxu2 }
  0xf5   : > { %v1756_v48 = vpop.f32.mrf.mxu0  ;;  %v1782_v6 = vpop.f32.mrf.mxu1 }
  0xf6   : > { %v611_v59 = vmul.f32 %v1756_v48, %v1756_v48  ;;  %v572_v61 = vadd.f32 %v571_v58, %v1756_v48  ;;  %v619_v42 = vmul.f32 %v1782_v6, %v1782_v6 }
  0xf8   : > { %v642_v0 = vadd.f32 %v641_v60, %v611_v59  ;;  %v623_v59 = vmul.f32 %v1735_v36, %v1735_v36 }
  0xfc   : > { %v1816_v54 = vpop.f32.mrf.mxu2 }
  0xfd   : > { %v1772_v62 = vpop.f32.mrf.mxu0  ;;  %v1803_v40 = vpop.f32.mrf.mxu1 }
  0xfe   : > { %v573_v1 = vadd.f32 %v572_v61, %v1772_v62  ;;  %v612_v2 = vmul.f32 %v1772_v62, %v1772_v62  ;;  %v620_v49 = vmul.f32 %v1803_v40, %v1803_v40 }
 0x100   : > { %v574_v4 = vadd.f32 %v573_v1, %v1713_v25  ;;  %v643_v5 = vadd.f32 %v642_v0, %v612_v2  ;;  %v624_v0 = vmul.f32 %v1751_v44, %v1751_v44 }
 0x102   : > { %v575_v8 = vadd.f32 %v574_v4, %v1717_v27  ;;  %v644_v9 = vadd.f32 %v643_v5, %v613_v3  ;;  %v1827_v3 = vpop.f32.mrf.mxu3  ;;  %v625_v4 = vmul.f32 %v1774_v63, %v1774_v63 }
 0x104   : > { %v576_v12 = vadd.f32 %v575_v8, %v1723_v30  ;;  %v645_v13 = vadd.f32 %v644_v9, %v614_v7  ;;  %v626_v9 = vmul.f32 %v1795_v17, %v1795_v17 }
 0x106   : > { %v646_v15 = vadd.f32 %v645_v13, %v615_v11  ;;  %v577_v16 = vadd.f32 %v576_v12, %v1729_v33  ;;  %v1835_v12 = vpop.f32.mrf.mxu2 }
 0x108   : > { %v578_v19 = vadd.f32 %v577_v16, %v1739_v38  ;;  %v647_v20 = vadd.f32 %v646_v15, %v616_v14  ;;  %v627_v15 = vmul.f32 %v1816_v54, %v1816_v54 }
 0x10a   : > { %v579_v22 = vadd.f32 %v578_v19, %v1761_v52  ;;  %v648_v23 = vadd.f32 %v647_v20, %v617_v18  ;;  %v628_v19 = vmul.f32 %v1835_v12, %v1835_v12  ;;  %v629_v20 = vmul.f32 %v1733_v35, %v1733_v35 }
 0x10c   : > { %v580_v41 = vadd.f32 %v579_v22, %v1782_v6  ;;  %v649_v43 = vadd.f32 %v648_v23, %v618_v21  ;;  %v1846_v23 = vpop.f32.mrf.mxu3 }
 0x10e   : > { %v650_v46 = vadd.f32 %v649_v43, %v619_v42  ;;  %v581_v47 = vadd.f32 %v580_v41, %v1803_v40  ;;  %v630_v41 = vmul.f32 %v1741_v39, %v1741_v39 }
 0x110   : > { %v582_v51 = vadd.f32 %v581_v47, %v1721_v29  ;;  %v651_v53 = vadd.f32 %v650_v46, %v620_v49  ;;  %v631_v46 = vmul.f32 %v1766_v56, %v1766_v56 }
 0x112   : > { %v583_v57 = vadd.f32 %v582_v51, %v1727_v32  ;;  %v652_v58 = vadd.f32 %v651_v53, %v621_v50  ;;  %v632_v50 = vmul.f32 %v1787_v10, %v1787_v10 }
 0x114   : > { %v584_v60 = vadd.f32 %v583_v57, %v1735_v36  ;;  %v653_v61 = vadd.f32 %v652_v58, %v622_v55  ;;  %v633_v55 = vmul.f32 %v1808_v45, %v1808_v45 }
 0x116   : > { %v654_v1 = vadd.f32 %v653_v61, %v623_v59  ;;  %v585_v2 = vadd.f32 %v584_v60, %v1751_v44  ;;  %v634_v60 = vmul.f32 %v1827_v3, %v1827_v3 }
 0x118   : > { %v586_v5 = vadd.f32 %v585_v2, %v1774_v63  ;;  %v655_v7 = vadd.f32 %v654_v1, %v624_v0  ;;  %v562_v0 = vpop.f32.mrf.mxu3 }
 0x11a   : > { %v587_v8 = vadd.f32 %v586_v5, %v1795_v17  ;;  %v656_v11 = vadd.f32 %v655_v7, %v625_v4  ;;  %v635_v4 = vmul.f32 %v1846_v23, %v1846_v23 }
 0x11c   : > { %v657_v13 = vadd.f32 %v656_v11, %v626_v9  ;;  %v588_v14 = vadd.f32 %v587_v8, %v1816_v54  ;;  %v636_v8 = vmul.f32 %v562_v0, %v562_v0 }
 0x11e   : > { %v658_v16 = vadd.f32 %v657_v13, %v627_v15  ;;  %v589_v18 = vadd.f32 %v588_v14, %v1835_v12 }
 0x120   : > { %v590_v21 = vadd.f32 %v589_v18, %v1733_v35  ;;  %v659_v22 = vadd.f32 %v658_v16, %v628_v19 }
 0x122   : > { %v591_v42 = vadd.f32 %v590_v21, %v1741_v39  ;;  %v660_v43 = vadd.f32 %v659_v22, %v629_v20 }
 0x124   : > { %v592_v47 = vadd.f32 %v591_v42, %v1766_v56  ;;  %v661_v49 = vadd.f32 %v660_v43, %v630_v41 }
 0x126   : > { %v662_v51 = vadd.f32 %v661_v49, %v631_v46  ;;  %v593_v53 = vadd.f32 %v592_v47, %v1787_v10 }
 0x128   : > { %v594_v57 = vadd.f32 %v593_v53, %v1808_v45  ;;  %v663_v58 = vadd.f32 %v662_v51, %v632_v50 }
 0x12a   : > { %v595_v59 = vadd.f32 %v594_v57, %v1827_v3  ;;  %v664_v61 = vadd.f32 %v663_v58, %v633_v55 }
 0x12c   : > { %v665_v1 = vadd.f32 %v664_v61, %v634_v60  ;;  %v596_v2 = vadd.f32 %v595_v59, %v1846_v23 }
 0x12e   : > { %v666_v5 = vadd.f32 %v665_v1, %v635_v4  ;;  %v597_v7 = vadd.f32 %v596_v2, %v562_v0 }
 0x130   : > { %v598_v9 = vrot.slane %v597_v7, 4  ;;  %v667_v11 = vadd.f32 %v666_v5, %v636_v8 }
 0x132   : > { %v599_v13 = vadd.f32 %v598_v9, %v597_v7  ;;  %v668_v14 = vrot.slane %v667_v11, 4  ;;  %v1882_v7 = vld [vmem:[%s2102_s2] ss:$0 sm:$0xff] }
 0x134   : > { %v600_v15 = vrot.slane %v599_v13, 2  ;;  %v669_v16 = vadd.f32 %v668_v14, %v667_v11 }
 0x136   : > { %v601_v18 = vadd.f32 %v600_v15, %v599_v13  ;;  %v670_v19 = vrot.slane %v669_v16, 2 }
 0x138   : > { %v602_v20 = vrot.slane %v601_v18, 1  ;;  %v671_v21 = vadd.f32 %v670_v19, %v669_v16 }
 0x13a   : > { %v603_v22 = vadd.f32 %v602_v20, %v601_v18  ;;  %v672_v41 = vrot.slane %v671_v21, 1 }
 0x13c   : > { %v1866_v42 = vmul.f32 0.00390625, %v603_v22  ;;  %v673_v43 = vadd.f32 %v672_v41, %v671_v21 }
 0x13e   : > { %v674_v46 = vmul.f32 0.00390625, %v673_v43  ;;  %v675_v47 = vmul.f32 %v1866_v42, %v1866_v42  ;;  %v708_v60 = vsub.f32 %v1846_v23, %v1866_v42  ;;  %v709_v61 = vsub.f32 %v562_v0, %v1866_v42 }
 0x13f   : > { %v678_v1 = vsub.f32 %v1711_v24, %v1866_v42  ;;  %v679_v4 = vsub.f32 %v1715_v26, %v1866_v42  ;;  %v680_v5 = vsub.f32 %v1719_v28, %v1866_v42  ;;  %v681_v23 = vsub.f32 %v1725_v31, %v1866_v42 }
 0x140   : > { %v676_v49 = vsub.f32 %v674_v46, %v675_v47  ;;  %v682_v24 = vsub.f32 %v1731_v34, %v1866_v42  ;;  %v683_v0 = vsub.f32 %v1737_v37, %v1866_v42  ;;  %v684_v26 = vsub.f32 %v1756_v48, %v1866_v42  ;;  %v1903_v34 = vld [vmem:[%s2103_s3] ss:$0 sm:$0xff] }
 0x141   : > { %v685_v28 = vsub.f32 %v1772_v62, %v1866_v42  ;;  %v686_v9 = vsub.f32 %v1713_v25, %v1866_v42  ;;  %v687_v31 = vsub.f32 %v1717_v27, %v1866_v42  ;;  %v688_v11 = vsub.f32 %v1723_v30, %v1866_v42 }
 0x142   : > { %v677_v50 = vmax.f32 %v676_v49, 0.0  ;;  %v689_v62 = vsub.f32 %v1729_v33, %v1866_v42  ;;  %v690_v25 = vsub.f32 %v1739_v38, %v1866_v42  ;;  %v691_v27 = vsub.f32 %v1761_v52, %v1866_v42 }
 0x143   : > { %v692_v13 = vsub.f32 %v1782_v6, %v1866_v42  ;;  %v693_v14 = vsub.f32 %v1803_v40, %v1866_v42  ;;  %v694_v30 = vsub.f32 %v1721_v29, %v1866_v42  ;;  %v695_v33 = vsub.f32 %v1727_v32, %v1866_v42 }
 0x144   : > { %v710_v51 = vadd.f32 1e-05, %v677_v50  ;;  %v696_v38 = vsub.f32 %v1735_v36, %v1866_v42  ;;  %v697_v52 = vsub.f32 %v1751_v44, %v1866_v42  ;;  %v698_v6 = vsub.f32 %v1774_v63, %v1866_v42 }
 0x145   : > { %v699_v40 = vsub.f32 %v1795_v17, %v1866_v42  ;;  %v700_v29 = vsub.f32 %v1816_v54, %v1866_v42  ;;  %v701_v32 = vsub.f32 %v1835_v12, %v1866_v42  ;;  %v702_v36 = vsub.f32 %v1733_v35, %v1866_v42 }
 0x146   : > { %1394 = vrsqrt.f32 %v710_v51  ;;  %vm717_vm1 = vweird.f32 %v710_v51  ;;  %v703_v44 = vsub.f32 %v1741_v39, %v1866_v42  ;;  %v704_v63 = vsub.f32 %v1766_v56, %v1866_v42 }
 0x147   : > { %v705_v17 = vsub.f32 %v1787_v10, %v1866_v42  ;;  %v706_v54 = vsub.f32 %v1808_v45, %v1866_v42  ;;  %v707_v12 = vsub.f32 %v1827_v3, %v1866_v42 }
 0x14c   : > { %v1395_v53 = vpop.eup %1394 }
 0x14d   : > { %v712_v55 = vmul.f32 %v1395_v53, %v710_v51  ;;  %vm718_vm0 = vweird.f32 %v1395_v53 }
 0x14e   : > { %vm719_vm2 = vmor %vm717_vm1, %vm718_vm0 }
 0x14f   : > { %v713_v57 = vmul.f32 %v1395_v53, %v712_v55 }
 0x151   : > { %v714_v58 = vmul.f32 0.5, %v713_v57 }
 0x153   : > { %v715_v59 = vsub.f32 1.5, %v714_v58 }
 0x155   : > { %v716_v2 = vmul.f32 %v1395_v53, %v715_v59 }
 0x157   : > { %v1892_v8 = vsel %vm719_vm2, %v1395_v53, %v716_v2 }
 0x158   : > { %v751_v37 = vmul.f32 %v1892_v8, %v708_v60  ;;  %v752_v48 = vmul.f32 %v1892_v8, %v709_v61  ;;  %v721_v35 = vmul.f32 %v1892_v8, %v678_v1  ;;  %v722_v22 = vmul.f32 %v1892_v8, %v679_v4 }
 0x159   : > { %v723_v39 = vmul.f32 %v1892_v8, %v680_v5  ;;  %v724_v56 = vmul.f32 %v1892_v8, %v681_v23  ;;  %v725_v10 = vmul.f32 %v1892_v8, %v682_v24  ;;  %v726_v43 = vmul.f32 %v1892_v8, %v683_v0 }
 0x15a   : > { %v786_v15 = vmul.f32 %v1882_v7, %v751_v37  ;;  %v787_v16 = vmul.f32 %v1882_v7, %v752_v48  ;;  %v727_v46 = vmul.f32 %v1892_v8, %v684_v26  ;;  %v728_v45 = vmul.f32 %v1892_v8, %v685_v28 }
 0x15b   : > { %v729_v47 = vmul.f32 %v1892_v8, %v686_v9  ;;  %v730_v3 = vmul.f32 %v1892_v8, %v687_v31  ;;  %v731_v42 = vmul.f32 %v1892_v8, %v688_v11  ;;  %v732_v49 = vmul.f32 %v1892_v8, %v689_v62 }
 0x15c   : > { %v821_v18 = vadd.f32 %v1903_v34, %v786_v15  ;;  %v822_v19 = vadd.f32 %v1903_v34, %v787_v16  ;;  %v733_v50 = vmul.f32 %v1892_v8, %v690_v25  ;;  %v734_v51 = vmul.f32 %v1892_v8, %v691_v27 }
 0x15d   : > { %v735_v53 = vmul.f32 %v1892_v8, %v692_v13  ;;  %v736_v55 = vmul.f32 %v1892_v8, %v693_v14  ;;  %v737_v57 = vmul.f32 %v1892_v8, %v694_v30  ;;  %v738_v58 = vmul.f32 %v1892_v8, %v695_v33 }
 0x15e   : > { %v853_v20 = vmax.f32 %v821_v18, 0.0  ;;  %v854_v21 = vmax.f32 %v822_v19, 0.0  ;;  %v739_v59 = vmul.f32 %v1892_v8, %v696_v38  ;;  %v740_v60 = vmul.f32 %v1892_v8, %v697_v52 }
 0x15f   : > { %v741_v61 = vmul.f32 %v1892_v8, %v698_v6  ;;  %v742_v1 = vmul.f32 %v1892_v8, %v699_v40  ;;  %v743_v2 = vmul.f32 %v1892_v8, %v700_v29  ;;  %v744_v4 = vmul.f32 %v1892_v8, %v701_v32 }
 0x160   : > { %v1274_v41 = vpack.c.bf16 %v854_v21, %v853_v20  ;;  %v745_v5 = vmul.f32 %v1892_v8, %v702_v36  ;;  %v746_v23 = vmul.f32 %v1892_v8, %v703_v44  ;;  %v747_v24 = vmul.f32 %v1892_v8, %v704_v63 }
 0x161   : > { %v748_v0 = vmul.f32 %v1892_v8, %v705_v17  ;;  %v749_v26 = vmul.f32 %v1892_v8, %v706_v54  ;;  %v750_v28 = vmul.f32 %v1892_v8, %v707_v12  ;;  %v756_v9 = vmul.f32 %v1882_v7, %v721_v35 }
 0x162   : > { %1290 = vst [vmem:[%s1964_s7 + $0x78] sm:$0xff] %v1274_v41   ;;  %v757_v31 = vmul.f32 %v1882_v7, %v722_v22  ;;  %v758_v37 = vmul.f32 %v1882_v7, %v723_v39  ;;  %v759_v48 = vmul.f32 %v1882_v7, %v724_v56  ;;  %v760_v11 = vmul.f32 %v1882_v7, %v725_v10 }
 0x163   : > { %v761_v62 = vmul.f32 %v1882_v7, %v726_v43  ;;  %v762_v25 = vmul.f32 %v1882_v7, %v727_v46  ;;  %v763_v27 = vmul.f32 %v1882_v7, %v728_v45  ;;  %v764_v13 = vmul.f32 %v1882_v7, %v729_v47 }
 0x164   : > { %v765_v8 = vmul.f32 %v1882_v7, %v730_v3  ;;  %v766_v14 = vmul.f32 %v1882_v7, %v731_v42  ;;  %v767_v15 = vmul.f32 %v1882_v7, %v732_v49  ;;  %v768_v16 = vmul.f32 %v1882_v7, %v733_v50 }
 0x165   : > { %v769_v30 = vmul.f32 %v1882_v7, %v734_v51  ;;  %v770_v33 = vmul.f32 %v1882_v7, %v735_v53  ;;  %v771_v38 = vmul.f32 %v1882_v7, %v736_v55  ;;  %v772_v52 = vmul.f32 %v1882_v7, %v737_v57 }
 0x166   : > { %v773_v6 = vmul.f32 %v1882_v7, %v738_v58  ;;  %v774_v40 = vmul.f32 %v1882_v7, %v739_v59  ;;  %v775_v18 = vmul.f32 %v1882_v7, %v740_v60  ;;  %v776_v19 = vmul.f32 %v1882_v7, %v741_v61 }
 0x167   : > { %v777_v29 = vmul.f32 %v1882_v7, %v742_v1  ;;  %v778_v32 = vmul.f32 %v1882_v7, %v743_v2  ;;  %v779_v36 = vmul.f32 %v1882_v7, %v744_v4  ;;  %v780_v44 = vmul.f32 %v1882_v7, %v745_v5 }
 0x168   : > { %v781_v63 = vmul.f32 %v1882_v7, %v746_v23  ;;  %v782_v17 = vmul.f32 %v1882_v7, %v747_v24  ;;  %v783_v20 = vmul.f32 %v1882_v7, %v748_v0  ;;  %v784_v21 = vmul.f32 %v1882_v7, %v749_v26 }
 0x169   : > { %v785_v54 = vmul.f32 %v1882_v7, %v750_v28  ;;  %v791_v12 = vadd.f32 %v1903_v34, %v756_v9  ;;  %v792_v35 = vadd.f32 %v1903_v34, %v757_v31  ;;  %v793_v22 = vadd.f32 %v1903_v34, %v758_v37 }
 0x16a   : > { %v794_v39 = vadd.f32 %v1903_v34, %v759_v48  ;;  %v795_v56 = vadd.f32 %v1903_v34, %v760_v11  ;;  %v796_v41 = vadd.f32 %v1903_v34, %v761_v62  ;;  %v797_v10 = vadd.f32 %v1903_v34, %v762_v25 }
 0x16b   : > { %v798_v43 = vadd.f32 %v1903_v34, %v763_v27  ;;  %v799_v46 = vadd.f32 %v1903_v34, %v764_v13  ;;  %v800_v7 = vadd.f32 %v1903_v34, %v765_v8  ;;  %v801_v45 = vadd.f32 %v1903_v34, %v766_v14 }
 0x16c   : > { %v802_v47 = vadd.f32 %v1903_v34, %v767_v15  ;;  %v803_v3 = vadd.f32 %v1903_v34, %v768_v16  ;;  %v804_v42 = vadd.f32 %v1903_v34, %v769_v30  ;;  %v805_v49 = vadd.f32 %v1903_v34, %v770_v33 }
 0x16d   : > { %v806_v50 = vadd.f32 %v1903_v34, %v771_v38  ;;  %v807_v51 = vadd.f32 %v1903_v34, %v772_v52  ;;  %v808_v53 = vadd.f32 %v1903_v34, %v773_v6  ;;  %v809_v55 = vadd.f32 %v1903_v34, %v774_v40 }
 0x16e   : > { %v810_v57 = vadd.f32 %v1903_v34, %v775_v18  ;;  %v811_v58 = vadd.f32 %v1903_v34, %v776_v19  ;;  %v823_v59 = vmax.f32 %v791_v12, 0.0  ;;  %v824_v60 = vmax.f32 %v792_v35, 0.0 }
 0x16f   : > { %v825_v61 = vmax.f32 %v793_v22, 0.0  ;;  %v826_v1 = vmax.f32 %v794_v39, 0.0  ;;  %v827_v2 = vmax.f32 %v795_v56, 0.0  ;;  %v828_v4 = vmax.f32 %v796_v41, 0.0 }
 0x170   : > { %v812_v5 = vadd.f32 %v1903_v34, %v777_v29  ;;  %v813_v23 = vadd.f32 %v1903_v34, %v778_v32  ;;  %v829_v24 = vmax.f32 %v797_v10, 0.0  ;;  %v830_v0 = vmax.f32 %v798_v43, 0.0 }
 0x171   : > { %v814_v26 = vadd.f32 %v1903_v34, %v779_v36  ;;  %v815_v28 = vadd.f32 %v1903_v34, %v780_v44  ;;  %v831_v9 = vmax.f32 %v799_v46, 0.0  ;;  %v832_v31 = vmax.f32 %v800_v7, 0.0 }
 0x172   : > { %v816_v37 = vadd.f32 %v1903_v34, %v781_v63  ;;  %v833_v48 = vmax.f32 %v801_v45, 0.0  ;;  %v834_v11 = vmax.f32 %v802_v47, 0.0  ;;  %v835_v62 = vmax.f32 %v803_v3, 0.0 }
 0x173   : > { %v836_v25 = vmax.f32 %v804_v42, 0.0  ;;  %v1199_v27 = vpack.c.bf16 %v824_v60, %v823_v59  ;;  %v1204_v13 = vpack.c.bf16 %v826_v1, %v825_v61  ;;  %v1209_v8 = vpack.c.bf16 %v828_v4, %v827_v2 }
 0x174   : > { %v817_v14 = vadd.f32 %v1903_v34, %v782_v17  ;;  %v837_v15 = vmax.f32 %v805_v49, 0.0  ;;  %v838_v16 = vmax.f32 %v806_v50, 0.0  ;;  %v1214_v30 = vpack.c.bf16 %v830_v0, %v829_v24 }
 0x175   : > { %v818_v33 = vadd.f32 %v1903_v34, %v783_v20  ;;  %v839_v38 = vmax.f32 %v807_v51, 0.0  ;;  %v840_v52 = vmax.f32 %v808_v53, 0.0  ;;  %1200 = vst [vmem:[%s1964_s7] sm:$0xff] %v1199_v27   ;;  %v1219_v6 = vpack.c.bf16 %v832_v31, %v831_v9 }
 0x176   : > { %v819_v40 = vadd.f32 %v1903_v34, %v784_v21  ;;  %v841_v18 = vmax.f32 %v809_v55, 0.0  ;;  %v842_v19 = vmax.f32 %v810_v57, 0.0  ;;  %1276 = vst [vmem:[%s1964_s7 + $0x8] sm:$0xff] %v1204_v13   ;;  %v1224_v29 = vpack.c.bf16 %v834_v11, %v833_v48 }
 0x177   : > { %v820_v32 = vadd.f32 %v1903_v34, %v785_v54  ;;  %v843_v36 = vmax.f32 %v811_v58, 0.0  ;;  %v844_v44 = vmax.f32 %v812_v5, 0.0  ;;  %1277 = vst [vmem:[%s1964_s7 + $0x10] sm:$0xff] %v1209_v8   ;;  %v1229_v63 = vpack.c.bf16 %v836_v25, %v835_v62 }
 0x178   : > { %v845_v17 = vmax.f32 %v813_v23, 0.0  ;;  %v846_v20 = vmax.f32 %v814_v26, 0.0  ;;  %1278 = vst [vmem:[%s1964_s7 + $0x18] sm:$0xff] %v1214_v30   ;;  %v1234_v12 = vpack.c.bf16 %v838_v16, %v837_v15  ;;  %v847_v21 = vmax.f32 %v815_v28, 0.0 }
 0x179   : > { %v848_v35 = vmax.f32 %v816_v37, 0.0  ;;  %1279 = vst [vmem:[%s1964_s7 + $0x20] sm:$0xff] %v1219_v6   ;;  %v1239_v22 = vpack.c.bf16 %v840_v52, %v839_v38  ;;  %v849_v34 = vmax.f32 %v817_v14, 0.0  ;;  %v850_v54 = vmax.f32 %v818_v33, 0.0 }
 0x17a   : > { %1280 = vst [vmem:[%s1964_s7 + $0x28] sm:$0xff] %v1224_v29   ;;  %v1244_v39 = vpack.c.bf16 %v842_v19, %v841_v18  ;;  %v851_v56 = vmax.f32 %v819_v40, 0.0  ;;  %v852_v41 = vmax.f32 %v820_v32, 0.0  ;;  %v1249_v10 = vpack.c.bf16 %v844_v44, %v843_v36 }
 0x17b   : > { %1281 = vst [vmem:[%s1964_s7 + $0x30] sm:$0xff] %v1229_v63   ;;  %v1254_v43 = vpack.c.bf16 %v846_v20, %v845_v17  ;;  %v1259_v46 = vpack.c.bf16 %v848_v35, %v847_v21  ;;  %v1264_v7 = vpack.c.bf16 %v850_v54, %v849_v34 }
 0x17c   : > { %1282 = vst [vmem:[%s1964_s7 + $0x38] sm:$0xff] %v1234_v12   ;;  %v1269_v45 = vpack.c.bf16 %v852_v41, %v851_v56 }
 0x17d   : > { %1283 = vst [vmem:[%s1964_s7 + $0x40] sm:$0xff] %v1239_v22  }
 0x17e   : > { %1284 = vst [vmem:[%s1964_s7 + $0x48] sm:$0xff] %v1244_v39  }
 0x17f   : > { %1285 = vst [vmem:[%s1964_s7 + $0x50] sm:$0xff] %v1249_v10  }
 0x180   : > { %1286 = vst [vmem:[%s1964_s7 + $0x58] sm:$0xff] %v1254_v43  }
 0x181   : > { %1287 = vst [vmem:[%s1964_s7 + $0x60] sm:$0xff] %v1259_v46  }
 0x182   : > { %1288 = vst [vmem:[%s1964_s7 + $0x68] sm:$0xff] %v1264_v7  }
 0x183   : > { %1289 = vst [vmem:[%s1964_s7 + $0x70] sm:$0xff] %v1269_v45  }
 0x184   : > { %1483 = shalt.err (!%p1480_p0)
}
 0x185   : > { %s1547_s10 = smov 64   ;;  %s1548_s23 = smov 4  }
 0x186   : > { %1321 = dma.vmem_to_hbm [thread:$0]  (%p1656_p5), %s934_s27, 2048, %s936_s28, %s920_s29, %s1547_s10, %s1547_s10, %s1548_s23  }
 0x187 PF: > { %s950_s25 = sand.u32 1, %s1522_s15   ;;  %p1332_p3 = pnand %p1061_p11, %p1623_p6 }
 0x188   : > { %s951_s30 = scalar_lea.sflag [#allocation4], %s950_s25 }
 0x189   : > { %p1333_p7 = pneg %p1332_p3 }
 0x18b   : > { %1517 = dma.done.wait (%p1333_p7), %s951_s30, 2048  }
 0x18c   : > { %1519 = vsyncadd (%p1333_p7), %s951_s30, 4294965248  ;;  %s21_s20 = sadd.s32 1, %s1542_s20   ;;  %s2120_s12 = sld [smem:[#allocation11_spill]] }
 0x18d   : > { %p18_p9 = scmp.ge.s32.totalorder %s21_s20, 4   ;;  %s2121_s15 = smov %s1526_s16 }
 0x18e   : > { %s2122_s16 = smov %s1530_s17  ;;  %s2123_s17 = smov %s1665_s22 }
 0x18f   : > { %s2124_s18 = smov %s1538_s19  ;;  %20 = sbr.rel (!%p18_p9) target bundleno = 9 (0x9), region = 92 }
 0x192   : > { %s2125_s19 = smov %s2120_s12 }
 0x194   :  { %957 = vsyncpa [#allocation3], 1 }
 0x195   :  { %959 = vsyncpa [#allocation3 + $0x1], 1 }
 0x196   :  { %960 = vsyncpa [#allocation6], 1 }
 0x197   :  { %961 = vsyncpa [#allocation4], 1 }
 0x198   :  { %963 = vsyncpa [#allocation4 + $0x1], 1 }

</bundles_post_ra>
